<compile_context>
chip_gen: v5e
topology: v5e:2x2
jax: 0.10.0
libtpu: 0.0.40
codegen_flags: <defaults>
</compile_context>

<pallas_src>
import functools

import jax
import jax.numpy as jnp
import numpy as np
from jax.experimental import pallas as pl
from jax.experimental.pallas import tpu as pltpu


def _chol_pt_kernel(k_ref, x_ref, o_ref, *, compute_dtype):
    # k_ref : (n*n, n*n)  kron(L, L)^T in compute_dtype (resident every step)
    # x_ref : (Mb,  n*n)  row-major flattened input SPD matrices
    # o_ref : (Mb,  n*n)  row-major flattened  L @ X @ L^T
    x = x_ref[...].astype(compute_dtype)      # on-chip cast -> single-pass MXU
    y = jnp.dot(x, k_ref[...], preferred_element_type=jnp.float32)
    o_ref[...] = y.astype(o_ref.dtype)


def _pick_block_rows(M, block_rows):
    """Rows per grid step.

    Prefers an Mb that (a) is a multiple of 8 (sublane), (b) divides M so the
    final block is not ragged (no wrapper pad / slice, no masked vst), and
    (c) yields >= 2 grid steps for large batches ("parallel" only helps v7x's
    two TensorCores if there is something to shard).  Falls back to a ragged
    (Pallas-masked) final block when no such divisor exists.
    """
    cap = min(block_rows, M)
    if M >= 512:                         # big enough that 2 TCs matter on v7x
        cap = min(cap, -(-M // 2))       # force grid >= 2
    Mb = cap - cap % 8 if cap >= 8 else cap
    Mb = max(Mb, 1)
    step = 8 if Mb >= 8 else 1
    for cand in range(Mb, 0, -step):
        if M % cand == 0:
            return cand
    return Mb                            # ragged final block (masked by Pallas)


def cholesky_pt_spd(X, W, *, block_rows=1024, compute_dtype=jnp.bfloat16):
    """CholeskyPtSPD.forward: Y[b, c] = L @ X[b, c] @ L^T with L = cholesky(W).

    X : (N, h, n, n) batch of SPD matrices
    W : (n, n)       SPD weight (the module initializes it to eye(n))

    compute_dtype is the MXU operand dtype (the explicit precision control):
    bf16 (default, single-pass MXU, accumulation still f32) or f32.
    """
    N, h, n, n2 = X.shape
    assert n == n2, "X must hold square (n, n) matrices"
    assert W.shape == (n, n)
    # Lane-density is ideal when n*n is a multiple of 128 (n = 16 in the
    # module); other n still compile and run, just with masked lanes.

    # TODO(synk): the Cholesky factorization of the tiny (n, n) weight is an
    # inherently sequential algorithm with no useful Pallas/TPU-kernel form; it
    # is done once here with jnp.linalg.cholesky (negligible vs the batched work).
    L = jnp.linalg.cholesky(W.astype(jnp.float32))

    # vec_row(L X L^T) = vec_row(X) @ kron(L, L)^T.  Build the kron in f32 and
    # pre-transpose it on the host so the kernel contracts canonical axes
    # (no per-step transpose of the resident weight); cast no lower than bf16.
    Kt = jnp.kron(L, L).T.astype(compute_dtype)            # (n*n, n*n)

    M, nn = N * h, n * n
    Xf = X.reshape(M, nn)                                   # no pad, no copy

    Mb = _pick_block_rows(M, block_rows)
    grid = pl.cdiv(M, Mb)

    kernel = functools.partial(_chol_pt_kernel, compute_dtype=compute_dtype)

    out_flat = pl.pallas_call(
        kernel,
        out_shape=jax.ShapeDtypeStruct((M, nn), X.dtype),
        grid_spec=pltpu.PrefetchScalarGridSpec(
            num_scalar_prefetch=0,
            grid=(grid,),
            in_specs=[
                pl.BlockSpec((nn, nn), lambda i: (0, 0)),   # kron(L,L)^T: resident
                pl.BlockSpec((Mb, nn), lambda i: (i, 0)),   # X row slab
            ],
            out_specs=pl.BlockSpec((Mb, nn), lambda i: (i, 0)),
        ),
        compiler_params=pltpu.CompilerParams(
            dimension_semantics=("parallel",),              # v7x: both TensorCores
        ),
        cost_estimate=pl.CostEstimate(
            flops=2 * M * nn * nn,
            transcendentals=0,
            bytes_accessed=(M * nn * Xf.dtype.itemsize      # read X
                            + nn * nn * Kt.dtype.itemsize   # read kron (once)
                            + M * nn * X.dtype.itemsize),   # write Y
        ),
    )(Kt, Xf)

    # The module's trailing permute/contiguous/view/permute is a value-preserving
    # round-trip back to (N, h, n, n) -> nothing to do here.
    return out_flat.reshape(N, h, n, n)


def _cholesky_pt_spd_ref(X, W):
    # Pure-JAX reference for correctness checking.
    L = jnp.linalg.cholesky(W.astype(jnp.float32))
    return jnp.einsum("ij,bhjk,lk->bhil", L, X.astype(jnp.float32), L,
                      precision=jax.lax.Precision.HIGHEST)


if __name__ == "__main__":
    key = jax.random.PRNGKey(0)
    N, h, n = 2, 4, 16
    k_x, k_w = jax.random.split(key)

    # Batch of SPD inputs X: (N, h, n, n).
    A = jax.random.normal(k_x, (N, h, n, n), dtype=jnp.float32)
    X = jnp.einsum("bhij,bhkj->bhik", A, A,
                   precision=jax.lax.Precision.HIGHEST) + jnp.eye(n, dtype=jnp.float32)

    # (1) Module default: weight = eye(n) -> forward is the identity map
    #     (exact up to the bf16 rounding of the X operand fed to the MXU).
    W_id = jnp.eye(n, dtype=jnp.float32)
    Y_id = jax.block_until_ready(cholesky_pt_spd(X, W_id))
    assert Y_id.shape == (N, h, n, n), Y_id.shape
    np.testing.assert_allclose(np.asarray(Y_id), np.asarray(X), rtol=1e-2, atol=1e-5)

    # (2) Generic SPD weight exercises the full congruence path (default bf16
    #     operand configuration -> bf16-operand-level tolerances).
    B = jax.random.normal(k_w, (n, n), dtype=jnp.float32)
    W = B @ B.T + n * jnp.eye(n, dtype=jnp.float32)
    Y = jax.block_until_ready(cholesky_pt_spd(X, W))
    Y_ref = _cholesky_pt_spd_ref(X, W)
    assert Y.shape == (N, h, n, n), Y.shape

    err = np.abs(np.asarray(Y) - np.asarray(Y_ref))
    ref_max = float(np.abs(np.asarray(Y_ref)).max())
    rel_fro = float(np.linalg.norm(err) / np.linalg.norm(np.asarray(Y_ref)))
    assert rel_fro < 2e-2, f"relative Frobenius error too large: {rel_fro}"
    assert float(err.max()) < 2e-2 * ref_max, (float(err.max()), ref_max)

    print("KERNEL_OK")
</pallas_src>

<mosaic_0001>
module attributes {stable_mosaic.version = 11 : i64} {
  func.func @_chol_pt_kernel(%arg0: i32, %arg1: memref<256x256xbf16, #tpu.memory_space<vmem>>, %arg2: memref<8x256xf32, #tpu.memory_space<vmem>>, %arg3: memref<8x256xf32, #tpu.memory_space<vmem>>) attributes {dimension_semantics = [#tpu.dimension_semantics<parallel>], iteration_bounds = array<i64: 1>, scalar_prefetch = 0 : i64, scratch_operands = 0 : i64, tpu.core_type = #tpu.core_type<tc>, window_params = [{pipeline_mode = #tpu.pipeline_mode<synchronous>, transform_indices = @transform_0, window_bounds = array<i64: 256, 256>}, {transform_indices = @transform_1, window_bounds = array<i64: 8, 256>}, {transform_indices = @transform_2, window_bounds = array<i64: 8, 256>}]} {
    %c0 = arith.constant 0 : index
    %c0_0 = arith.constant 0 : index
    %0 = vector.load %arg2[%c0, %c0_0] : memref<8x256xf32, #tpu.memory_space<vmem>>, vector<8x256xf32>
    %1 = arith.truncf %0 : vector<8x256xf32> to vector<8x256xbf16>
    %c0_1 = arith.constant 0 : index
    %c0_2 = arith.constant 0 : index
    %2 = vector.load %arg1[%c0_1, %c0_2] : memref<256x256xbf16, #tpu.memory_space<vmem>>, vector<256x256xbf16>
    %cst = arith.constant dense<0.000000e+00> : vector<8x256xf32>
    %3 = tpu.matmul %1, %2, %cst {dimension_numbers = #tpu.dot_dimension_numbers<[1], [0], [0], [1], [0, 0, 1, 1], [], []>} : vector<8x256xbf16>, vector<256x256xbf16>, vector<8x256xf32> -> vector<8x256xf32>
    %c0_3 = arith.constant 0 : index
    %c0_4 = arith.constant 0 : index
    %4 = vector.load %arg3[%c0_3, %c0_4] : memref<8x256xf32, #tpu.memory_space<vmem>>, vector<8x256xf32>
    tpu.vector_store %arg3[%c0_3, %c0_4], %3 {strides = array<i32>} : memref<8x256xf32, #tpu.memory_space<vmem>>, vector<8x256xf32>,
    return
  }
  func.func @transform_0(%arg0: i32) -> (i32, i32) {
    %c0_i32 = arith.constant 0 : i32
    %c0_i32_0 = arith.constant 0 : i32
    %c0_i32_1 = arith.constant 0 : i32
    return %c0_i32, %c0_i32_0 : i32, i32
  }
  func.func @transform_1(%arg0: i32) -> (i32, i32) {
    %c0_i32 = arith.constant 0 : i32
    %c0_i32_0 = arith.constant 0 : i32
    return %arg0, %c0_i32 : i32, i32
  }
  func.func @transform_2(%arg0: i32) -> (i32, i32) {
    %c0_i32 = arith.constant 0 : i32
    %c0_i32_0 = arith.constant 0 : i32
    return %arg0, %c0_i32 : i32, i32
  }
}

</mosaic_0001>

<bundles_post_ra>
// kernel: tpu_custom_call.1
= control target key start
LH: loop header
LB: loop body
LE: loop exit
PB: predicated region body
PF: predicated region fallthrough
CT: control target
= control target key end

     0   :  { %7 = vsyncpa [#allocation3], 0  ;;  %s582_s0 = inlined_call_operand.hbm [shape: bf16[256,256], index: 0, kind: input, shape index: {}]   ;;  %s583_s1 = inlined_call_operand.hbm [shape: f32[8,256], index: 1, kind: input, shape index: {}]   ;;  %s584_s2 = inlined_call_operand.hbm [shape: f32[8,256], index: 2, kind: output, shape index: {}]  }
   0x1   :  { %8 = vsyncpa [#allocation6], 0 }
   0x2   :  { %9 = vsyncpa [#allocation4], 0  ;;  %s14_s11 = sshll.u32 %s582_s0, 4  ;;  %s553_s12 = smov [#allocation2]   ;;  %s15_s11 = int_to_ptr.hbm [resolvable:$true] %s14_s11 }
   0x3   :  { %s16_s13 = sshll.u32 %s553_s12, 4  ;;  %s28_s16 = sshll.u32 %s583_s1, 4  ;;  %s17_s13 = int_to_ptr.vmem [resolvable:$true] %s16_s13  ;;  %s29_s16 = int_to_ptr.hbm [resolvable:$true] %s28_s16 }
   0x4   :  { %s554_s17 = smov 128   ;;  %s555_s18 = smov 8  }
   0x5   :  { %22 = dma.hbm_to_vmem [thread:$0]  %s15_s11, 4096, %s17_s13, [#allocation3], %s554_s17, %s554_s17, %s555_s18  }
   0x6   :  { %s556_s19 = smov [#allocation5]  }
   0x7   :  { %s30_s20 = sshll.u32 %s556_s19, 4  ;;  %s31_s20 = int_to_ptr.vmem [resolvable:$true] %s30_s20 }
   0x8   :  { %33 = dma.hbm_to_vmem [thread:$0]  %s29_s16, 256, %s31_s20, [#allocation6]  }
   0x9   :  { %547 = dma.done.wait [#allocation3], 4096  }
   0xa   :  { %548 = vsyncadd [#allocation3], 4294963200 }
   0xb   :  { %549 = dma.done.wait [#allocation6], 256  }
   0xc   :  { %550 = vsyncadd [#allocation6], 4294967040  ;;  %v368_v0 = vld [vmem:[#allocation2 + $0x70] sm:$0xf]  ;;  %v453_v1 = vld [vmem:[#allocation2 + $0x74] sm:$0xf0] }
   0xd   :  { %v432_v2 = vld [vmem:[#allocation2 + $0xf0] sm:$0xf]  ;;  %v369_v3 = vor.u32 %v453_v1, %v368_v0  ;;  %v469_v4 = vld [vmem:[#allocation2 + $0xf4] sm:$0xf0]  ;;  %v452_v5 = vld [vmem:[#allocation2 + $0x74] sm:$0xf] }
   0xe   :  { %v370_v6 = vld [vmem:[#allocation2 + $0x78] sm:$0xf0]  ;;  %v433_v7 = vor.u32 %v469_v4, %v432_v2  ;;  %v468_v9 = vld [vmem:[#allocation2 + $0xf4] sm:$0xf]  ;;  %v360_v11 = vld [vmem:[#allocation2 + $0x60] sm:$0xf] }
   0xf   :  { %v373_v8 = vor.u32 %v452_v5, %v370_v6  ;;  %v434_v10 = vld [vmem:[#allocation2 + $0xf8] sm:$0xf0]  ;;  %238 = vmatpush.bf16.msra.mxu0 %v369_v3  ;;  %v451_v13 = vld [vmem:[#allocation2 + $0x64] sm:$0xf0]  ;;  %v424_v14 = vld [vmem:[#allocation2 + $0xe0] sm:$0xf] }
  0x10   :  { %v437_v12 = vor.u32 %v468_v9, %v434_v10  ;;  %v467_v15 = vld [vmem:[#allocation2 + $0xe4] sm:$0xf0]  ;;  %251 = vmatpush.bf16.msra.mxu1 %v433_v7  ;;  %v361_v16 = vor.u32 %v451_v13, %v360_v11  ;;  %v450_v18 = vld [vmem:[#allocation2 + $0x64] sm:$0xf]  ;;  %v362_v19 = vld [vmem:[#allocation2 + $0x68] sm:$0xf0] }
  0x11   :  { %264 = vmatpush.bf16.msra.mxu2 %v373_v8  ;;  %v425_v17 = vor.u32 %v467_v15, %v424_v14  ;;  %v466_v20 = vld [vmem:[#allocation2 + $0xe4] sm:$0xf]  ;;  %v365_v21 = vor.u32 %v450_v18, %v362_v19  ;;  %v426_v22 = vld [vmem:[#allocation2 + $0xe8] sm:$0xf0]  ;;  %v352_v23 = vld [vmem:[#allocation2 + $0x50] sm:$0xf] }
  0x12   :  { %277 = vmatpush.bf16.msra.mxu3 %v437_v12  ;;  %v449_v24 = vld [vmem:[#allocation2 + $0x54] sm:$0xf0]  ;;  %v429_v25 = vor.u32 %v466_v20, %v426_v22  ;;  %v416_v26 = vld [vmem:[#allocation2 + $0xd0] sm:$0xf]  ;;  %v448_v28 = vld [vmem:[#allocation2 + $0x54] sm:$0xf] }
  0x13   :  { %v465_v27 = vld [vmem:[#allocation2 + $0xd4] sm:$0xf0]  ;;  %239 = vmatpush.bf16.msra.mxu0 %v361_v16  ;;  %v353_v29 = vor.u32 %v449_v24, %v352_v23  ;;  %v354_v30 = vld [vmem:[#allocation2 + $0x58] sm:$0xf0]  ;;  %v464_v31 = vld [vmem:[#allocation2 + $0xd4] sm:$0xf] }
  0x14   :  { %v418_v32 = vld [vmem:[#allocation2 + $0xd8] sm:$0xf0]  ;;  %252 = vmatpush.bf16.msra.mxu1 %v425_v17  ;;  %v417_v33 = vor.u32 %v465_v27, %v416_v26  ;;  %v357_v34 = vor.u32 %v448_v28, %v354_v30  ;;  %v344_v35 = vld [vmem:[#allocation2 + $0x40] sm:$0xf]  ;;  %v447_v36 = vld [vmem:[#allocation2 + $0x44] sm:$0xf0] }
  0x15   :  { %265 = vmatpush.bf16.msra.mxu2 %v365_v21  ;;  %v408_v37 = vld [vmem:[#allocation2 + $0xc0] sm:$0xf]  ;;  %v421_v38 = vor.u32 %v464_v31, %v418_v32  ;;  %v463_v39 = vld [vmem:[#allocation2 + $0xc4] sm:$0xf0]  ;;  %v446_v40 = vld [vmem:[#allocation2 + $0x44] sm:$0xf]  ;;  %v345_v44 = vor.u32 %v447_v36, %v344_v35 }
  0x16   :  { %278 = vmatpush.bf16.msra.mxu3 %v429_v25  ;;  %v346_v41 = vld [vmem:[#allocation2 + $0x48] sm:$0xf0]  ;;  %v462_v42 = vld [vmem:[#allocation2 + $0xc4] sm:$0xf]  ;;  %v409_v45 = vor.u32 %v463_v39, %v408_v37  ;;  %v336_v47 = vld [vmem:[#allocation2 + $0x30] sm:$0xf] }
  0x17   :  { %v410_v43 = vld [vmem:[#allocation2 + $0xc8] sm:$0xf0]  ;;  %240 = vmatpush.bf16.msra.mxu0 %v353_v29  ;;  %v349_v46 = vor.u32 %v446_v40, %v346_v41  ;;  %v445_v48 = vld [vmem:[#allocation2 + $0x34] sm:$0xf0]  ;;  %v400_v49 = vld [vmem:[#allocation2 + $0xb0] sm:$0xf] }
  0x18   :  { %253 = vmatpush.bf16.msra.mxu1 %v417_v33  ;;  %v413_v50 = vor.u32 %v462_v42, %v410_v43  ;;  %v461_v51 = vld [vmem:[#allocation2 + $0xb4] sm:$0xf0]  ;;  %v444_v52 = vld [vmem:[#allocation2 + $0x34] sm:$0xf]  ;;  %v338_v53 = vld [vmem:[#allocation2 + $0x38] sm:$0xf0]  ;;  %v337_v56 = vor.u32 %v445_v48, %v336_v47 }
  0x19   :  { %266 = vmatpush.bf16.msra.mxu2 %v357_v34  ;;  %v460_v54 = vld [vmem:[#allocation2 + $0xb4] sm:$0xf]  ;;  %v402_v55 = vld [vmem:[#allocation2 + $0xb8] sm:$0xf0]  ;;  %v401_v57 = vor.u32 %v461_v51, %v400_v49  ;;  %v341_v58 = vor.u32 %v444_v52, %v338_v53  ;;  %v328_v59 = vld [vmem:[#allocation2 + $0x20] sm:$0xf] }
  0x1a   :  { %279 = vmatpush.bf16.msra.mxu3 %v421_v38  ;;  %v443_v60 = vld [vmem:[#allocation2 + $0x24] sm:$0xf0]  ;;  %v392_v61 = vld [vmem:[#allocation2 + $0xa0] sm:$0xf]  ;;  %v405_v62 = vor.u32 %v460_v54, %v402_v55  ;;  %v442_v0 = vld [vmem:[#allocation2 + $0x24] sm:$0xf] }
  0x1b   :  { %241 = vmatpush.bf16.msra.mxu0 %v345_v44  ;;  %v459_v63 = vld [vmem:[#allocation2 + $0xa4] sm:$0xf0]  ;;  %v330_v1 = vld [vmem:[#allocation2 + $0x28] sm:$0xf0]  ;;  %v458_v2 = vld [vmem:[#allocation2 + $0xa4] sm:$0xf]  ;;  %v329_v4 = vor.u32 %v443_v60, %v328_v59 }
  0x1c   :  { %254 = vmatpush.bf16.msra.mxu1 %v409_v45  ;;  %v394_v3 = vld [vmem:[#allocation2 + $0xa8] sm:$0xf0]  ;;  %v393_v5 = vor.u32 %v459_v63, %v392_v61  ;;  %v333_v6 = vor.u32 %v442_v0, %v330_v1  ;;  %v320_v7 = vld [vmem:[#allocation2 + $0x10] sm:$0xf]  ;;  %v441_v8 = vld [vmem:[#allocation2 + $0x14] sm:$0xf0] }
  0x1d   :  { %267 = vmatpush.bf16.msra.mxu2 %v349_v46  ;;  %v384_v9 = vld [vmem:[#allocation2 + $0x90] sm:$0xf]  ;;  %v397_v10 = vor.u32 %v458_v2, %v394_v3  ;;  %v457_v11 = vld [vmem:[#allocation2 + $0x94] sm:$0xf0]  ;;  %v440_v12 = vld [vmem:[#allocation2 + $0x14] sm:$0xf]  ;;  %v321_v16 = vor.u32 %v441_v8, %v320_v7 }
  0x1e   :  { %280 = vmatpush.bf16.msra.mxu3 %v413_v50  ;;  %v322_v13 = vld [vmem:[#allocation2 + $0x18] sm:$0xf0]  ;;  %v456_v14 = vld [vmem:[#allocation2 + $0x94] sm:$0xf]  ;;  %v385_v17 = vor.u32 %v457_v11, %v384_v9  ;;  %v312_v19 = vld [vmem:[#allocation2] sm:$0xf] }
  0x1f   :  { %242 = vmatpush.bf16.msra.mxu0 %v337_v56  ;;  %v386_v15 = vld [vmem:[#allocation2 + $0x98] sm:$0xf0]  ;;  %v325_v18 = vor.u32 %v440_v12, %v322_v13  ;;  %v439_v20 = vld [vmem:[#allocation2 + $0x4] sm:$0xf0]  ;;  %v376_v21 = vld [vmem:[#allocation2 + $0x80] sm:$0xf] }
  0x20   :  { %255 = vmatpush.bf16.msra.mxu1 %v401_v57  ;;  %v389_v22 = vor.u32 %v456_v14, %v386_v15  ;;  %v455_v23 = vld [vmem:[#allocation2 + $0x84] sm:$0xf0]  ;;  %v438_v24 = vld [vmem:[#allocation2 + $0x4] sm:$0xf]  ;;  %v314_v25 = vld [vmem:[#allocation2 + $0x8] sm:$0xf0]  ;;  %v313_v28 = vor.u32 %v439_v20, %v312_v19 }
  0x21   :  { %268 = vmatpush.bf16.msra.mxu2 %v341_v58  ;;  %v454_v26 = vld [vmem:[#allocation2 + $0x84] sm:$0xf]  ;;  %v378_v27 = vld [vmem:[#allocation2 + $0x88] sm:$0xf0]  ;;  %v377_v30 = vor.u32 %v455_v23, %v376_v21  ;;  %v317_v31 = vor.u32 %v438_v24, %v314_v25  ;;  %s557_s0 = smov [#allocation7]   ;;  %s299_s23 = sshll.u32 %s584_s2, 4  ;;  %s300_s23 = int_to_ptr.hbm [resolvable:$true] %s299_s23 }
  0x22   :  { %281 = vmatpush.bf16.msra.mxu3 %v405_v62  ;;  %v42_v29 = vld [vmem:[#allocation5] sm:$0xff]  ;;  %v43_v32 = vld [vmem:[#allocation5 + $0x8] sm:$0xff]  ;;  %v381_v33 = vor.u32 %v454_v26, %v378_v27  ;;  %s297_s1 = sshll.u32 %s557_s0, 4  ;;  %s298_s1 = int_to_ptr.vmem [resolvable:$true] %s297_s1 }
  0x23   :  { %243 = vmatpush.bf16.msra.mxu0 %v329_v4  ;;  %v44_v34 = vpack.c.bf16 %v42_v29, %v42_v29  ;;  %v45_v35 = vpack.c.bf16 %v43_v32, %v43_v32 }
  0x24   :  { %256 = vmatpush.bf16.msra.mxu1 %v393_v5 }
  0x25   :  { %269 = vmatpush.bf16.msra.mxu2 %v333_v6 }
  0x26   :  { %282 = vmatpush.bf16.msra.mxu3 %v397_v10 }
  0x27   :  { %244 = vmatpush.bf16.msra.mxu0 %v321_v16 }
  0x28   :  { %257 = vmatpush.bf16.msra.mxu1 %v385_v17 }
  0x29   :  { %270 = vmatpush.bf16.msra.mxu2 %v325_v18 }
  0x2a   :  { %283 = vmatpush.bf16.msra.mxu3 %v389_v22 }
  0x2b   :  { %245 = vmatpush.bf16.msra.mxu0 %v313_v28 }
  0x2c   :  { %258 = vmatpush.bf16.msra.mxu1 %v377_v30 }
  0x2d   :  { %271 = vmatpush.bf16.msra.mxu2 %v317_v31 }
  0x2e   :  { %284 = vmatpush.bf16.msra.mxu3 %v381_v33  ;;  %246 = vmatmul.bf16.vlgmr.msra.gmra.mxu0 %v44_v34 }
  0x2f   :  { %259 = vmatmul.bf16.vlgmr.msra.gmra.mxu1 %v45_v35 }
  0x30   :  { %272 = vmatmul.bf16.vlgmr.msra.gmra.mxu2 %v44_v34 }
  0x31   :  { %285 = vmatmul.bf16.vlgmr.msra.gmra.mxu3 %v45_v35 }
  0xab   :  { %v247_v36 = vpop.f32.mrf.mxu0 }
  0xac   :  { %v260_v37 = vpop.f32.mrf.mxu1 }
  0xad   :  { %v261_v38 = vadd.f32 %v260_v37, %v247_v36 }
  0xaf   :  { %290 = vst [vmem:[#allocation7] sm:$0xff] %v261_v38 }
  0xb3   :  { %v273_v39 = vpop.f32.mrf.mxu2  ;;  %v249_v41 = vpop.f32.mrf.mxu0 }
  0xb4   :  { %v286_v40 = vpop.f32.mrf.mxu3  ;;  %v262_v43 = vpop.f32.mrf.mxu1 }
  0xb5   :  { %v287_v42 = vadd.f32 %v286_v40, %v273_v39 }
  0xb7   :  { %291 = vst [vmem:[#allocation7 + $0x8] sm:$0xff] %v287_v42 }
  0xb8   :  { %302 = dma.vmem_to_hbm [thread:$0]  %s298_s1, 256, %s300_s23, [#allocation4]  }
  0xbb   :  { %v275_v44 = vpop.f32.mrf.mxu2 }
  0xbc   :  { %v288_v45 = vpop.f32.mrf.mxu3 }
  0xbd   :  { %551 = dma.done.wait [#allocation4], 256  }
  0xbe   :  { %552 = vsyncadd [#allocation4], 4294967040 }
  0xbf   :  { %307 = vsyncpa [#allocation3], 1 }
  0xc0   :  { %308 = vsyncpa [#allocation6], 1 }
  0xc1   :  { %309 = vsyncpa [#allocation4], 1 }

</bundles_post_ra>
